<compile_context>
chip_gen: v6e
topology: v6e:2x2x1
jax: 0.10.0
libtpu: 0.0.40
codegen_flags: <defaults>
</compile_context>

<pallas_src>
import jax
import jax.numpy as jnp
from jax.experimental import pallas as pl
from jax.experimental.pallas import tpu as pltpu

OBS_LEN = 2
H1 = 120
H2 = 84
ACT_LEN = 4          # TODO(synk): original module uses args.act_len; fixed to 4 here.
PAD = 128            # lane-padded width used for every hidden/output feature dim

# Packed-parameter layout: rows of a (PACKED_ROWS, PAD) bf16 buffer.
# Every slab starts on a multiple of 16 rows (bf16 sublane-group aligned views).
W1_ROW = 0                   # rows [0, OBS_LEN)        : w1, zero-padded cols H1..PAD
B1_ROW = 16                  # row  16                  : b1
W2_ROW = 32                  # rows [32, 32+PAD)        : w2 (zero-padded rows/cols)
B2_ROW = W2_ROW + PAD        # row  160                 : b2
W3_ROW = B2_ROW + 16         # rows [176, 176+PAD)      : w3 (zero-padded rows/cols)
B3_ROW = W3_ROW + PAD        # row  304                 : b3
PACKED_ROWS = B3_ROW + 16    # 320 rows total (multiple of 16)


def qnetwork_kernel(x_ref, p_ref, o_ref):
    x = x_ref[...]                                               # (TB, OBS_LEN) f32

    # ---- Layer 1: K=2 contraction on the VPU in f32 (broadcast-FMA) ----
    w1a = p_ref[W1_ROW:W1_ROW + 1, :].astype(jnp.float32)        # (1, 128)
    w1b = p_ref[W1_ROW + 1:W1_ROW + 2, :].astype(jnp.float32)    # (1, 128)
    b1 = p_ref[B1_ROW:B1_ROW + 1, :].astype(jnp.float32)         # (1, 128)
    h1 = x[:, 0:1] * w1a + x[:, 1:2] * w1b + b1                  # (TB, 128) f32
    h1 = jnp.maximum(h1, 0.0)

    # ---- Layer 2: bf16 MXU matmul, f32 accumulation ----
    w2 = p_ref[W2_ROW:W2_ROW + PAD, :]                           # (128, 128) bf16
    b2 = p_ref[B2_ROW:B2_ROW + 1, :].astype(jnp.float32)         # (1, 128)
    h2 = jnp.dot(h1.astype(jnp.bfloat16), w2,
                 preferred_element_type=jnp.float32) + b2
    h2 = jnp.maximum(h2, 0.0)

    # ---- Layer 3: bf16 MXU matmul; padded output lanes stay exactly 0 ----
    w3 = p_ref[W3_ROW:W3_ROW + PAD, :]                           # (128, 128) bf16
    b3 = p_ref[B3_ROW:B3_ROW + 1, :].astype(jnp.float32)         # (1, 128)
    out = jnp.dot(h2.astype(jnp.bfloat16), w3,
                  preferred_element_type=jnp.float32) + b3
    o_ref[...] = out.astype(o_ref.dtype)                         # lane-dense (TB, 128) bf16


def pack_params(params):
    """Pack (w1,b1,w2,b2,w3,b3) — stored (in_features, out_features) — into one
    zero-padded (PACKED_ROWS, 128) bf16 buffer. Zero padding keeps padded lanes exact."""
    w1, b1, w2, b2, w3, b3 = params
    act_len = w3.shape[1]
    p = jnp.zeros((PACKED_ROWS, PAD), jnp.float32)
    p = p.at[W1_ROW:W1_ROW + OBS_LEN, :H1].set(w1)
    p = p.at[B1_ROW, :H1].set(b1[0])
    p = p.at[W2_ROW:W2_ROW + H1, :H2].set(w2)
    p = p.at[B2_ROW, :H2].set(b2[0])
    p = p.at[W3_ROW:W3_ROW + H2, :act_len].set(w3)
    p = p.at[B3_ROW, :act_len].set(b3[0])
    return p.astype(jnp.bfloat16)


def _round_up(n, m):
    return ((n + m - 1) // m) * m


def _tiling_policy():
    """(max rows for a single block, minimum number of tiles once tiled)."""
    try:
        kind = jax.devices()[0].device_kind.lower()
    except Exception:
        kind = ""
    if "v7" in kind:
        # 2 TensorCores: shard the batch across them once it is big enough.
        return 512, 4
    # v5e / v6e: single TC, the grid is a serial loop -> fewer, fatter tiles.
    return 2048, 1


def _tile_rows(batch):
    """Return (tile_rows, grid_size, padded_batch)."""
    single_max, min_tiles = _tiling_policy()
    if batch <= single_max:
        b_pad = _round_up(batch, 8)
        return b_pad, 1, b_pad
    # Cap tiles at ~4096 rows (out block stays ~1 MiB bf16, well inside VMEM).
    tiles = max(min_tiles, pl.cdiv(batch, 4096))
    tb = _round_up(pl.cdiv(batch, tiles), 16)
    b_pad = _round_up(batch, tb)
    return tb, b_pad // tb, b_pad


def qnetwork_forward(x, packed, act_len=ACT_LEN):
    B = x.shape[0]
    tb, grid_b, b_pad = _tile_rows(B)
    if b_pad != B:
        x = jnp.concatenate(
            [x, jnp.zeros((b_pad - B, x.shape[1]), x.dtype)], axis=0)

    out_padded = pl.pallas_call(
        qnetwork_kernel,
        out_shape=jax.ShapeDtypeStruct((b_pad, PAD), jnp.bfloat16),
        grid=(grid_b,),
        in_specs=[
            pl.BlockSpec((tb, OBS_LEN), lambda i: (i, 0)),
            pl.BlockSpec((PACKED_ROWS, PAD), lambda i: (0, 0)),
        ],
        out_specs=pl.BlockSpec((tb, PAD), lambda i: (i, 0)),
        compiler_params=pltpu.CompilerParams(dimension_semantics=("parallel",)),
    )(x, packed)
    return out_padded[:B, :act_len].astype(jnp.float32)


def init_params(key):
    # Deterministic synthetic init (PyTorch-style uniform(-1/sqrt(fan_in), 1/sqrt(fan_in))).
    # Weights stored transposed vs. torch: (in_features, out_features).
    ks = jax.random.split(key, 6)

    def linear(kw, kb, fan_in, fan_out):
        bound = 1.0 / jnp.sqrt(jnp.float32(fan_in))
        w = jax.random.uniform(kw, (fan_in, fan_out), jnp.float32, -bound, bound)
        b = jax.random.uniform(kb, (1, fan_out), jnp.float32, -bound, bound)
        return w, b

    w1, b1 = linear(ks[0], ks[1], OBS_LEN, H1)
    w2, b2 = linear(ks[2], ks[3], H1, H2)
    w3, b3 = linear(ks[4], ks[5], H2, ACT_LEN)
    return (w1, b1, w2, b2, w3, b3)


def qnetwork_ref_f32(x, params):
    """Full-precision reference (the PyTorch forward)."""
    w1, b1, w2, b2, w3, b3 = params
    h1 = jnp.maximum(x @ w1 + b1, 0.0)
    h2 = jnp.maximum(h1 @ w2 + b2, 0.0)
    return h2 @ w3 + b3


def qnetwork_ref_matched(x, params):
    """Reference that mimics the kernel's bf16 weight / MXU / output numerics."""
    w1, b1, w2, b2, w3, b3 = params
    q = lambda a: a.astype(jnp.bfloat16)
    f = lambda a: q(a).astype(jnp.float32)
    w1f = f(w1)
    h1 = x[:, 0:1] * w1f[0:1, :] + x[:, 1:2] * w1f[1:2, :] + f(b1)
    h1 = jnp.maximum(h1, 0.0)
    h2 = jnp.dot(q(h1), q(w2), preferred_element_type=jnp.float32) + f(b2)
    h2 = jnp.maximum(h2, 0.0)
    out = jnp.dot(q(h2), q(w3), preferred_element_type=jnp.float32) + f(b3)
    return out.astype(jnp.bfloat16).astype(jnp.float32)


if __name__ == "__main__":
    key = jax.random.PRNGKey(0)
    k_params, k_x = jax.random.split(key)

    params = init_params(k_params)
    packed = pack_params(params)

    B = 8
    x = jax.random.normal(k_x, (B, OBS_LEN), jnp.float32)  # observation batch

    out = qnetwork_forward(x, packed)
    out = jax.block_until_ready(out)

    assert out.shape == (B, ACT_LEN)
    # Tight check against a reference that uses the same bf16 operand rounding.
    assert jnp.allclose(out, qnetwork_ref_matched(x, params), atol=1e-3, rtol=1e-3)
    # Loose sanity check against the exact f32 PyTorch-equivalent forward
    # (bf16 MXU operands are a deliberate accuracy/perf tradeoff).
    assert jnp.allclose(out, qnetwork_ref_f32(x, params), atol=5e-2, rtol=5e-2)

    print("KERNEL_OK")
</pallas_src>

<mosaic_0001>
module attributes {stable_mosaic.version = 11 : i64} {
  func.func @qnetwork_kernel(%arg0: i32, %arg1: memref<8x2xf32, #tpu.memory_space<vmem>>, %arg2: memref<320x128xbf16, #tpu.memory_space<vmem>>, %arg3: memref<8x128xbf16, #tpu.memory_space<vmem>>) attributes {dimension_semantics = [#tpu.dimension_semantics<parallel>], iteration_bounds = array<i64: 1>, scalar_prefetch = 0 : i64, scratch_operands = 0 : i64, tpu.core_type = #tpu.core_type<tc>, window_params = [{transform_indices = @transform_0, window_bounds = array<i64: 8, 2>}, {pipeline_mode = #tpu.pipeline_mode<synchronous>, transform_indices = @transform_1, window_bounds = array<i64: 320, 128>}, {transform_indices = @transform_2, window_bounds = array<i64: 8, 128>}]} {
    %c0 = arith.constant 0 : index
    %c0_0 = arith.constant 0 : index
    %0 = vector.load %arg1[%c0, %c0_0] : memref<8x2xf32, #tpu.memory_space<vmem>>, vector<8x2xf32>
    %c0_1 = arith.constant 0 : index
    %c0_2 = arith.constant 0 : index
    %1 = vector.load %arg2[%c0_1, %c0_2] : memref<320x128xbf16, #tpu.memory_space<vmem>>, vector<1x128xbf16>
    %2 = arith.extf %1 : vector<1x128xbf16> to vector<1x128xf32>
    %c1 = arith.constant 1 : index
    %c0_3 = arith.constant 0 : index
    %3 = vector.load %arg2[%c1, %c0_3] : memref<320x128xbf16, #tpu.memory_space<vmem>>, vector<1x128xbf16>
    %4 = arith.extf %3 : vector<1x128xbf16> to vector<1x128xf32>
    %c16 = arith.constant 16 : index
    %c0_4 = arith.constant 0 : index
    %5 = vector.load %arg2[%c16, %c0_4] : memref<320x128xbf16, #tpu.memory_space<vmem>>, vector<1x128xbf16>
    %6 = arith.extf %5 : vector<1x128xbf16> to vector<1x128xf32>
    %7 = vector.extract_strided_slice %0 {offsets = [0, 0], sizes = [8, 1], strides = [1, 1]} : vector<8x2xf32> to vector<8x1xf32>
    %8 = vector.broadcast %7 : vector<8x1xf32> to vector<8x128xf32>
    %9 = vector.broadcast %2 : vector<1x128xf32> to vector<8x128xf32>
    %10 = arith.mulf %8, %9 : vector<8x128xf32>
    %11 = vector.extract_strided_slice %0 {offsets = [0, 1], sizes = [8, 1], strides = [1, 1]} : vector<8x2xf32> to vector<8x1xf32>
    %12 = vector.broadcast %11 : vector<8x1xf32> to vector<8x128xf32>
    %13 = vector.broadcast %4 : vector<1x128xf32> to vector<8x128xf32>
    %14 = arith.mulf %12, %13 : vector<8x128xf32>
    %15 = arith.addf %10, %14 : vector<8x128xf32>
    %16 = vector.broadcast %6 : vector<1x128xf32> to vector<8x128xf32>
    %17 = arith.addf %15, %16 : vector<8x128xf32>
    %cst = arith.constant 0.000000e+00 : f32
    %18 = vector.broadcast %cst : f32 to vector<8x128xf32>
    %19 = arith.maximumf %17, %18 : vector<8x128xf32>
    %c32 = arith.constant 32 : index
    %c0_5 = arith.constant 0 : index
    %20 = vector.load %arg2[%c32, %c0_5] : memref<320x128xbf16, #tpu.memory_space<vmem>>, vector<128x128xbf16>
    %c160 = arith.constant 160 : index
    %c0_6 = arith.constant 0 : index
    %21 = vector.load %arg2[%c160, %c0_6] : memref<320x128xbf16, #tpu.memory_space<vmem>>, vector<1x128xbf16>
    %22 = arith.extf %21 : vector<1x128xbf16> to vector<1x128xf32>
    %23 = arith.truncf %19 : vector<8x128xf32> to vector<8x128xbf16>
    %cst_7 = arith.constant dense<0.000000e+00> : vector<8x128xf32>
    %24 = tpu.matmul %23, %20, %cst_7 {dimension_numbers = #tpu.dot_dimension_numbers<[1], [0], [0], [1], [0, 0, 1, 1], [], []>} : vector<8x128xbf16>, vector<128x128xbf16>, vector<8x128xf32> -> vector<8x128xf32>
    %25 = vector.broadcast %22 : vector<1x128xf32> to vector<8x128xf32>
    %26 = arith.addf %24, %25 : vector<8x128xf32>
    %cst_8 = arith.constant 0.000000e+00 : f32
    %27 = vector.broadcast %cst_8 : f32 to vector<8x128xf32>
    %28 = arith.maximumf %26, %27 : vector<8x128xf32>
    %c176 = arith.constant 176 : index
    %c0_9 = arith.constant 0 : index
    %29 = vector.load %arg2[%c176, %c0_9] : memref<320x128xbf16, #tpu.memory_space<vmem>>, vector<128x128xbf16>
    %c304 = arith.constant 304 : index
    %c0_10 = arith.constant 0 : index
    %30 = vector.load %arg2[%c304, %c0_10] : memref<320x128xbf16, #tpu.memory_space<vmem>>, vector<1x128xbf16>
    %31 = arith.extf %30 : vector<1x128xbf16> to vector<1x128xf32>
    %32 = arith.truncf %28 : vector<8x128xf32> to vector<8x128xbf16>
    %cst_11 = arith.constant dense<0.000000e+00> : vector<8x128xf32>
    %33 = tpu.matmul %32, %29, %cst_11 {dimension_numbers = #tpu.dot_dimension_numbers<[1], [0], [0], [1], [0, 0, 1, 1], [], []>} : vector<8x128xbf16>, vector<128x128xbf16>, vector<8x128xf32> -> vector<8x128xf32>
    %34 = vector.broadcast %31 : vector<1x128xf32> to vector<8x128xf32>
    %35 = arith.addf %33, %34 : vector<8x128xf32>
    %36 = arith.truncf %35 : vector<8x128xf32> to vector<8x128xbf16>
    %c0_12 = arith.constant 0 : index
    %c0_13 = arith.constant 0 : index
    %37 = vector.load %arg3[%c0_12, %c0_13] : memref<8x128xbf16, #tpu.memory_space<vmem>>, vector<8x128xbf16>
    tpu.vector_store %arg3[%c0_12, %c0_13], %36 {strides = array<i32>} : memref<8x128xbf16, #tpu.memory_space<vmem>>, vector<8x128xbf16>,
    return
  }
  func.func @transform_0(%arg0: i32) -> (i32, i32) {
    %c0_i32 = arith.constant 0 : i32
    %c0_i32_0 = arith.constant 0 : i32
    return %arg0, %c0_i32 : i32, i32
  }
  func.func @transform_1(%arg0: i32) -> (i32, i32) {
    %c0_i32 = arith.constant 0 : i32
    %c0_i32_0 = arith.constant 0 : i32
    %c0_i32_1 = arith.constant 0 : i32
    return %c0_i32, %c0_i32_0 : i32, i32
  }
  func.func @transform_2(%arg0: i32) -> (i32, i32) {
    %c0_i32 = arith.constant 0 : i32
    %c0_i32_0 = arith.constant 0 : i32
    return %arg0, %c0_i32 : i32, i32
  }
}

</mosaic_0001>

<bundles_post_ra>
// kernel: tpu_custom_call.1
= control target key start
LH: loop header
LB: loop body
LE: loop exit
PB: predicated region body
PF: predicated region fallthrough
CT: control target
= control target key end

     0   :  { %7 = vsyncpa [#allocation3], 0  ;;  %s492_s0 = inlined_call_operand.vmem [shape: f32[8,2], index: 0, kind: input, shape index: {}]   ;;  %s493_s1 = inlined_call_operand.hbm [shape: bf16[320,128], index: 1, kind: input, shape index: {}]   ;;  %s494_s2 = inlined_call_operand.hbm [shape: bf16[8,128], index: 2, kind: output, shape index: {}]  }
   0x1   :  { %8 = vsyncpa [#allocation4], 0  ;;  %s442_s9 = smov [#allocation2]  }
   0x2   :  { %s16_s10 = sshll.u32 %s442_s9, 4  ;;  %s17_s10 = int_to_ptr.vmem [resolvable:$true] %s16_s10 }
   0x3   :  { %s406_s11 = scalar_lea.vmem %s17_s10, 2560  ;;  %p411_p1 = scmp.lt.s32.totalorder %s17_s10, %s17_s10 }
   0x4   :  { %p407_p0 = scmp.ne.s32.totalorder %s17_s10, %s406_s11  ;;  %p412_p2 = scmp.lt.s32.totalorder %s406_s11, %s406_s11 }
   0x6   :  { %p413_p3 = por %p412_p2, %p411_p1 }
   0x8   :  { %p414_p4 = pnand %p413_p3, %p407_p0 }
   0xa   :  { %417 = shalt.err (!%p414_p4)
}
   0xb   :  { %s443_s12 = smov 64   ;;  %s444_s13 = smov 4  }
   0xc   :  { %22 = dma.hbm_to_vmem [thread:$0]  %s493_s1, 2560, %s17_s10, [#allocation3], %s443_s12, %s443_s12, %s444_s13  }
   0xd   :  { %438 = dma.done.wait [#allocation3], 2560  }
   0xe   :  { %439 = vsyncadd [#allocation3], 4294964736  ;;  %v445_v0 = vmov 0   ;;  %v446_v1 = vmov 0.0   ;;  %v27_v2 = vld [vmem:[%s492_s0] sm:$0xff]  ;;  %v382_v3 = vld [vmem:[#allocation2 + $0x48] sm:$0xff]   ;;  %v37_v18 = vlaneseq }
   0xf   :  { %380 = vset.pattern.permute.xlu0 %v445_v0  ;;  %332 = vmatprep.subr.bf16.mxu0 %v446_v1  ;;  %v383_v4 = vld [vmem:[#allocation2 + $0x40] sm:$0xff]   ;;  %v447_v5 = vmov 1   ;;  %v384_v6 = vld [vmem:[#allocation2 + $0x38] sm:$0xff]   ;;  %vm448_vm0 = vmmov 0   ;;  %v385_v7 = vld [vmem:[#allocation2 + $0x30] sm:$0xff]   ;;  %s449_s0 = smov [#allocation5]  }
  0x10   :  { %352 = vmatprep.subr.bf16.mxu1 %v446_v1  ;;  %34 = vperm.xlu0 %380, %v27_v2   ;;  %v390_v8 = vld [vmem:[#allocation2 + $0x90] sm:$0xff]   ;;  %v391_v9 = vld [vmem:[#allocation2 + $0x88] sm:$0xff]   ;;  %v392_v11 = vld [vmem:[#allocation2 + $0x80] sm:$0xff]   ;;  %v38_v19 = vshrl.u32 %v37_v18, 7  ;;  %s289_s1 = sshll.u32 %s449_s0, 4  ;;  %s290_s1 = int_to_ptr.vmem [resolvable:$true] %s289_s1 }
  0x11   :  { %333 = vmatpush3.bf16.msra.mxu0 %v382_v3  ;;  %348 = vmatprep.mubr.msk.bf16.mxu0 %vm448_vm0, %v446_v1  ;;  %v386_v10 = vld [vmem:[#allocation2 + $0x28] sm:$0xff]   ;;  %v387_v12 = vld [vmem:[#allocation2 + $0x20] sm:$0xff]   ;;  %v393_v13 = vld [vmem:[#allocation2 + $0x78] sm:$0xff]   ;;  %s418_s18 = scalar_lea.vmem %s290_s1, 64  ;;  %p423_p6 = scmp.lt.s32.totalorder %s290_s1, %s290_s1 }
  0x12   :  { %334 = vmatprep.subr.bf16.mxu0 %v446_v1  ;;  %368 = vmatprep.mubr.msk.bf16.mxu1 %vm448_vm0, %v446_v1  ;;  %v388_v14 = vld [vmem:[#allocation2 + $0x18] sm:$0xff]   ;;  %v394_v15 = vld [vmem:[#allocation2 + $0x70] sm:$0xff]   ;;  %v395_v17 = vld [vmem:[#allocation2 + $0x68] sm:$0xff]   ;;  %v39_v22 = vsub.s32 0, %v38_v19  ;;  %v48_v23 = vsub.s32 1, %v38_v19  ;;  %p419_p5 = scmp.ne.s32.totalorder %s290_s1, %s418_s18  ;;  %p424_p7 = scmp.lt.s32.totalorder %s418_s18, %s418_s18 }
  0x13   :  { %353 = vmatpush3.bf16.msra.mxu1 %v390_v8  ;;  %v389_v16 = vld [vmem:[#allocation2 + $0x10] sm:$0xff]   ;;  %v28_v20 = vld [vmem:[#allocation2] sm:$0x1]  ;;  %v30_v24 = vld [vmem:[#allocation2 + $0x8] sm:$0x1] }
  0x14   :  { %381 = vset.pattern.permute.xlu0 %v447_v5  ;;  %354 = vmatprep.subr.bf16.mxu1 %v446_v1  ;;  %v29_v21 = vunpack.c.l.bf16 %v28_v20  ;;  %v31_v27 = vunpack.c.l.bf16 %v30_v24  ;;  %v396_v37 = vld [vmem:[#allocation2 + $0x60] sm:$0xff]   ;;  %v397_v38 = vld [vmem:[#allocation2 + $0x58] sm:$0xff]   ;;  %v74_v39 = vld [vmem:[#allocation2 + $0x50] sm:$0x1]  ;;  %p425_p8 = por %p424_p7, %p423_p6 }
  0x15   :  { %43 = vperm.xlu0 %381, %v27_v2   ;;  %335 = vmatpush3.bf16.msra.mxu0 %v383_v4  ;;  %v75_v40 = vunpack.c.l.bf16 %v74_v39  ;;  %v186_v49 = vld [vmem:[#allocation2 + $0x98] sm:$0x1] }
  0x16   :  { %336 = vmatprep.subr.bf16.mxu0 %v446_v1  ;;  %v40_v26 = vrot.slane %v29_v21, %v39_v22  ;;  %v49_v28 = vrot.slane %v29_v21, %v48_v23  ;;  %v55_v31 = vrot.slane %v31_v27, %v39_v22  ;;  %v187_v50 = vunpack.c.l.bf16 %v186_v49  ;;  %p426_p9 = pnand %p425_p8, %p419_p5 }
  0x17   :  { %355 = vmatpush3.bf16.msra.mxu1 %v391_v9  ;;  %v80_v41 = vrot.slane %v75_v40, %v39_v22 }
  0x18   :  { %356 = vmatprep.subr.bf16.mxu1 %v446_v1  ;;  %v192_v51 = vrot.slane %v187_v50, %v39_v22 }
  0x19   :  { %337 = vmatpush3.bf16.msra.mxu0 %v384_v6 }
  0x1a   :  { %338 = vmatprep.subr.bf16.mxu0 %v446_v1 }
  0x1b   :  { %357 = vmatpush3.bf16.msra.mxu1 %v392_v11 }
  0x1c   :  { %358 = vmatprep.subr.bf16.mxu1 %v446_v1 }
  0x1d   :  { %339 = vmatpush3.bf16.msra.mxu0 %v385_v7 }
  0x1e   :  { %340 = vmatprep.subr.bf16.mxu0 %v446_v1 }
  0x1f   :  { %359 = vmatpush3.bf16.msra.mxu1 %v393_v13 }
  0x20   :  { %360 = vmatprep.subr.bf16.mxu1 %v446_v1 }
  0x21   :  { %341 = vmatpush3.bf16.msra.mxu0 %v386_v10 }
  0x22   :  { %342 = vmatprep.subr.bf16.mxu0 %v446_v1 }
  0x23   :  { %361 = vmatpush3.bf16.msra.mxu1 %v394_v15 }
  0x24   :  { %362 = vmatprep.subr.bf16.mxu1 %v446_v1 }
  0x25   :  { %343 = vmatpush3.bf16.msra.mxu0 %v387_v12 }
  0x26   :  { %344 = vmatprep.subr.bf16.mxu0 %v446_v1 }
  0x27   :  { %363 = vmatpush3.bf16.msra.mxu1 %v395_v17 }
  0x28   :  { %364 = vmatprep.subr.bf16.mxu1 %v446_v1 }
  0x29   :  { %345 = vmatpush3.bf16.msra.mxu0 %v388_v14 }
  0x2a   :  { %346 = vmatprep.subr.bf16.mxu0 %v446_v1 }
  0x2b   :  { %365 = vmatpush3.bf16.msra.mxu1 %v396_v37 }
  0x2c   :  { %366 = vmatprep.subr.bf16.mxu1 %v446_v1 }
  0x2d   :  { %347 = vmatpush3.bf16.msra.mxu0 %v389_v16 }
  0x2f   :  { %367 = vmatpush3.bf16.msra.mxu1 %v397_v38 }
  0x8b   :  { %v35_v25 = vpop.permute.xlu0 %34 }
  0x8c   :  { %v41_v30 = vmul.f32 %v40_v26, %v35_v25 }
  0x90   :  { %v44_v29 = vpop.permute.xlu0 %43 }
  0x91   :  { %v50_v32 = vmul.f32 %v49_v28, %v44_v29 }
  0x93   :  { %v51_v33 = vadd.f32 %v50_v32, %v41_v30 }
  0x95   :  { %v56_v34 = vadd.f32 %v55_v31, %v51_v33 }
  0x97   :  { %v57_v35 = vmax.f32 %v56_v34, 0.0 }
  0x99   :  { %v76_v36 = vpack.c.bf16 %v57_v35, %v57_v35 }
  0x9b   :  { %349 = vmatmul.mubr.bf16.vlgmr.msra.gmra.mxu0 %v76_v36 }
 0x15b   :  { %v163_v42 = vpop.f32.mrf.mxu0 }
 0x15c   :  { %v164_v43 = vadd.f32 %v163_v42, %v80_v41 }
 0x15d   :  { %v350_v44 = vpop.f32.mrf.mxu0 }
 0x15e   :  { %v169_v45 = vmax.f32 %v164_v43, 0.0 }
 0x15f   :  { %v166_v46 = vpop.f32.mrf.mxu0 }
 0x160   :  { %v188_v47 = vpack.c.bf16 %v169_v45, %v169_v45 }
 0x161   :  { %v351_v48 = vpop.f32.mrf.mxu0 }
 0x162   :  { %369 = vmatmul.mubr.bf16.vlgmr.msra.gmra.mxu1 %v188_v47 }
 0x222   :  { %v275_v52 = vpop.f32.mrf.mxu1 }
 0x223   :  { %v276_v53 = vadd.f32 %v275_v52, %v192_v51 }
 0x224   :  { %v370_v54 = vpop.f32.mrf.mxu1 }
 0x225   :  { %v281_v55 = vpack.c.bf16 %v276_v53, %v276_v53 }
 0x226   :  { %v278_v56 = vpop.f32.mrf.mxu1 }
 0x227   :  { %282 = vst [vmem:[#allocation5] sm:$0xf] %v281_v55 }
 0x228   :  { %v371_v57 = vpop.f32.mrf.mxu1 }
 0x229   :  { %429 = shalt.err (!%p426_p9)
}
 0x22a   :  { %292 = dma.vmem_to_hbm [thread:$0]  %s290_s1, 64, %s494_s2, [#allocation4]  }
 0x22b   :  { %440 = dma.done.wait [#allocation4], 64  }
 0x22c   :  { %441 = vsyncadd [#allocation4], 4294967232 }
 0x22d   :  { %296 = vsyncpa [#allocation3], 1 }
 0x22e   :  { %297 = vsyncpa [#allocation4], 1 }

</bundles_post_ra>
